<compile_context>
chip_gen: v6e
topology: v6e:2x2x1
jax: 0.10.0
libtpu: 0.0.40
codegen_flags: <defaults>
</compile_context>

<pallas_src>
import functools

import jax
import jax.numpy as jnp
from jax.experimental import pallas as pl
from jax.experimental.pallas import tpu as pltpu

_TILE_VMEM_BUDGET = 32 << 20   # per-step tile budget (fits v7x's 64 MiB physical VMEM)
_VMEM_LIMIT_BYTES = 48 << 20   # explicit scoped-VMEM limit handed to Mosaic


def _round_up(x: int, m: int) -> int:
    return ((x + m - 1) // m) * m


def _choose_row_tile(bs: int, gc: int, gh: int, go: int) -> int:
    """Largest batch-row tile fitting the VMEM budget; keep >=2 grid steps if possible."""
    weight_bytes = 4 * (gc * gh + gh * go + gh + go)          # resident block-diag weights
    per_row_bytes = 4 * (2 * (gc + go) + gh)                  # dbl-buffered io + f32 hidden
    avail = max(_TILE_VMEM_BUDGET - weight_bytes, 1 << 20)
    tb = min(avail // per_row_bytes, 4096)
    tb = max(8, (tb // 8) * 8)
    if bs <= tb:
        if bs >= 16:
            # keep at least 2 grid steps so both TensorCores (v7x) get work
            tb = _round_up(pl.cdiv(bs, 2), 8)
            if tb >= bs:
                tb = bs
        else:
            tb = bs                                           # block == full dim is legal
    return tb


def _mlp_kernel(x_ref, w1_ref, b1_ref, w2_ref, b2_ref, o_ref):
    # x_ref : (TB, G*C)    w1_ref: (G*C, G*H)   b1_ref: (1, G*H)
    # w2_ref: (G*H, G*O)   b2_ref: (1, G*O)     o_ref : (TB, G*O)
    x = x_ref[...]
    h = jnp.dot(x, w1_ref[...], preferred_element_type=jnp.float32) + b1_ref[...]
    h = jnp.maximum(h, 0.0)                                   # ReLU
    o = jnp.dot(h.astype(w2_ref.dtype), w2_ref[...],
                preferred_element_type=jnp.float32) + b2_ref[...]
    o_ref[...] = o.astype(o_ref.dtype)


@functools.partial(jax.jit, static_argnames=("num_classes",))
def mlpc_encoder_forward(x, w1, b1, w2, b2, *, num_classes: int):
    """Fused MLPCEncoder forward.

    x  : (bs, num_vars) with num_vars % num_classes == 0
    w1 : (num_classes, H), b1: (H,), w2: (H, O), b2: (O,)
    returns (bs, (num_vars // num_classes) * O), identical layout to the PyTorch reshape.
    """
    bs, num_vars = x.shape
    C = num_classes
    G = num_vars // C
    H = w1.shape[1]
    O = w2.shape[1]
    GC, GH, GO = G * C, G * H, G * O

    # Block-diagonal weights: one (C,H)/(H,O) block per group on the diagonal, so
    # the per-group MLP becomes one lane-dense dense matmul over the full row.
    # TODO(synk): O(G^2) weight footprint; for very large G fall back to a
    #             transposed (C, rows) formulation instead.
    eye1 = jnp.eye(G, dtype=w1.dtype)
    w1_bd = (eye1[:, None, :, None] * w1[None, :, None, :]).reshape(GC, GH)
    eye2 = jnp.eye(G, dtype=w2.dtype)
    w2_bd = (eye2[:, None, :, None] * w2[None, :, None, :]).reshape(GH, GO)
    b1_bd = jnp.tile(b1, G).reshape(1, GH)
    b2_bd = jnp.tile(b2, G).reshape(1, GO)

    TB = _choose_row_tile(bs, GC, GH, GO)
    grid = (pl.cdiv(bs, TB),)

    cost = pl.CostEstimate(
        flops=2 * bs * GC * GH + 2 * bs * GH * GO,
        transcendentals=0,
        bytes_accessed=4 * (bs * GC + GC * GH + GH + GH * GO + GO + bs * GO),
    )

    return pl.pallas_call(
        _mlp_kernel,
        out_shape=jax.ShapeDtypeStruct((bs, GO), x.dtype),
        grid=grid,
        in_specs=[
            pl.BlockSpec((TB, GC), lambda i: (i, 0)),   # streamed row tile (lane-dense)
            pl.BlockSpec((GC, GH), lambda i: (0, 0)),   # resident block-diag W1
            pl.BlockSpec((1, GH), lambda i: (0, 0)),    # resident b1
            pl.BlockSpec((GH, GO), lambda i: (0, 0)),   # resident block-diag W2
            pl.BlockSpec((1, GO), lambda i: (0, 0)),    # resident b2
        ],
        out_specs=pl.BlockSpec((TB, GO), lambda i: (i, 0)),   # lane-dense output tile
        compiler_params=pltpu.CompilerParams(
            dimension_semantics=("parallel",),
            vmem_limit_bytes=_VMEM_LIMIT_BYTES,
        ),
        cost_estimate=cost,
    )(x, w1_bd, b1_bd, w2_bd, b2_bd)


class MLPCEncoder:
    """JAX/Pallas port of the PyTorch MLPCEncoder with a Linear-ReLU-Linear MLP."""

    def __init__(self, num_classes: int, w1, b1, w2, b2):
        self.num_classes = num_classes
        self.w1, self.b1, self.w2, self.b2 = w1, b1, w2, b2
        self.hparams = {}

    def __call__(self, x):
        return mlpc_encoder_forward(
            x, self.w1, self.b1, self.w2, self.b2, num_classes=self.num_classes
        )


if __name__ == "__main__":
    key = jax.random.PRNGKey(0)

    # Small shapes consistent with the module: x is (bs, num_vars), num_vars = G*C.
    bs = 16
    num_classes = 4
    num_groups = 32
    num_vars = num_groups * num_classes          # 128 -> lane-dense input
    hidden = 32
    out_per_group = num_classes                  # MLP: C -> hidden -> C

    k1, k2, k3, k4, kx = jax.random.split(key, 5)
    w1 = 0.1 * jax.random.normal(k1, (num_classes, hidden), jnp.float32)
    b1 = 0.1 * jax.random.normal(k2, (hidden,), jnp.float32)
    w2 = 0.1 * jax.random.normal(k3, (hidden, out_per_group), jnp.float32)
    b2 = 0.1 * jax.random.normal(k4, (out_per_group,), jnp.float32)
    x = jax.random.normal(kx, (bs, num_vars), jnp.float32)

    enc = MLPCEncoder(num_classes, w1, b1, w2, b2)
    out = jax.block_until_ready(enc(x))
    assert out.shape == (bs, num_groups * out_per_group), out.shape

    # Pure-JAX reference of the same forward (per-group MLP, then flatten).
    x3 = x.reshape(bs, num_groups, num_classes)
    h_ref = jnp.maximum(jnp.einsum("bgc,ch->bgh", x3, w1) + b1, 0.0)
    ref = (jnp.einsum("bgh,ho->bgo", h_ref, w2) + b2).reshape(bs, -1)
    assert jnp.allclose(out, ref, atol=1e-5, rtol=1e-5), float(jnp.max(jnp.abs(out - ref)))

    print("KERNEL_OK")
</pallas_src>

<mosaic_0001>
module attributes {stable_mosaic.version = 11 : i64} {
  func.func @_mlp_kernel(%arg0: i32, %arg1: memref<8x128xf32, #tpu.memory_space<vmem>>, %arg2: memref<128x1024xf32, #tpu.memory_space<vmem>>, %arg3: memref<1x1024xf32, #tpu.memory_space<vmem>>, %arg4: memref<1024x128xf32, #tpu.memory_space<vmem>>, %arg5: memref<1x128xf32, #tpu.memory_space<vmem>>, %arg6: memref<8x128xf32, #tpu.memory_space<vmem>>) attributes {dimension_semantics = [#tpu.dimension_semantics<parallel>], iteration_bounds = array<i64: 2>, scalar_prefetch = 0 : i64, scratch_operands = 0 : i64, tpu.core_type = #tpu.core_type<tc>, window_params = [{transform_indices = @transform_0, window_bounds = array<i64: 8, 128>}, {pipeline_mode = #tpu.pipeline_mode<synchronous>, transform_indices = @transform_1, window_bounds = array<i64: 128, 1024>}, {pipeline_mode = #tpu.pipeline_mode<synchronous>, transform_indices = @transform_2, window_bounds = array<i64: 1, 1024>}, {pipeline_mode = #tpu.pipeline_mode<synchronous>, transform_indices = @transform_3, window_bounds = array<i64: 1024, 128>}, {pipeline_mode = #tpu.pipeline_mode<synchronous>, transform_indices = @transform_4, window_bounds = array<i64: 1, 128>}, {transform_indices = @transform_5, window_bounds = array<i64: 8, 128>}]} {
    %c0 = arith.constant 0 : index
    %c0_0 = arith.constant 0 : index
    %0 = vector.load %arg1[%c0, %c0_0] : memref<8x128xf32, #tpu.memory_space<vmem>>, vector<8x128xf32>
    %c0_1 = arith.constant 0 : index
    %c0_2 = arith.constant 0 : index
    %1 = vector.load %arg2[%c0_1, %c0_2] : memref<128x1024xf32, #tpu.memory_space<vmem>>, vector<128x1024xf32>
    %cst = arith.constant dense<0.000000e+00> : vector<8x1024xf32>
    %2 = tpu.matmul %0, %1, %cst {dimension_numbers = #tpu.dot_dimension_numbers<[1], [0], [0], [1], [0, 0, 1, 1], [], []>} : vector<8x128xf32>, vector<128x1024xf32>, vector<8x1024xf32> -> vector<8x1024xf32>
    %c0_3 = arith.constant 0 : index
    %c0_4 = arith.constant 0 : index
    %3 = vector.load %arg3[%c0_3, %c0_4] : memref<1x1024xf32, #tpu.memory_space<vmem>>, vector<1x1024xf32>
    %4 = vector.broadcast %3 : vector<1x1024xf32> to vector<8x1024xf32>
    %5 = arith.addf %2, %4 : vector<8x1024xf32>
    %cst_5 = arith.constant 0.000000e+00 : f32
    %6 = vector.broadcast %cst_5 : f32 to vector<8x1024xf32>
    %7 = arith.maximumf %5, %6 : vector<8x1024xf32>
    %c0_6 = arith.constant 0 : index
    %c0_7 = arith.constant 0 : index
    %8 = vector.load %arg4[%c0_6, %c0_7] : memref<1024x128xf32, #tpu.memory_space<vmem>>, vector<1024x128xf32>
    %cst_8 = arith.constant dense<0.000000e+00> : vector<8x128xf32>
    %9 = tpu.matmul %7, %8, %cst_8 {dimension_numbers = #tpu.dot_dimension_numbers<[1], [0], [0], [1], [0, 0, 1, 1], [], []>} : vector<8x1024xf32>, vector<1024x128xf32>, vector<8x128xf32> -> vector<8x128xf32>
    %c0_9 = arith.constant 0 : index
    %c0_10 = arith.constant 0 : index
    %10 = vector.load %arg5[%c0_9, %c0_10] : memref<1x128xf32, #tpu.memory_space<vmem>>, vector<1x128xf32>
    %11 = vector.broadcast %10 : vector<1x128xf32> to vector<8x128xf32>
    %12 = arith.addf %9, %11 : vector<8x128xf32>
    %c0_11 = arith.constant 0 : index
    %c0_12 = arith.constant 0 : index
    %13 = vector.load %arg6[%c0_11, %c0_12] : memref<8x128xf32, #tpu.memory_space<vmem>>, vector<8x128xf32>
    tpu.vector_store %arg6[%c0_11, %c0_12], %12 {strides = array<i32>} : memref<8x128xf32, #tpu.memory_space<vmem>>, vector<8x128xf32>,
    return
  }
  func.func @transform_0(%arg0: i32) -> (i32, i32) {
    %c0_i32 = arith.constant 0 : i32
    %c0_i32_0 = arith.constant 0 : i32
    return %arg0, %c0_i32 : i32, i32
  }
  func.func @transform_1(%arg0: i32) -> (i32, i32) {
    %c0_i32 = arith.constant 0 : i32
    %c0_i32_0 = arith.constant 0 : i32
    %c0_i32_1 = arith.constant 0 : i32
    return %c0_i32, %c0_i32_0 : i32, i32
  }
  func.func @transform_2(%arg0: i32) -> (i32, i32) {
    %c0_i32 = arith.constant 0 : i32
    %c0_i32_0 = arith.constant 0 : i32
    %c0_i32_1 = arith.constant 0 : i32
    return %c0_i32, %c0_i32_0 : i32, i32
  }
  func.func @transform_3(%arg0: i32) -> (i32, i32) {
    %c0_i32 = arith.constant 0 : i32
    %c0_i32_0 = arith.constant 0 : i32
    %c0_i32_1 = arith.constant 0 : i32
    return %c0_i32, %c0_i32_0 : i32, i32
  }
  func.func @transform_4(%arg0: i32) -> (i32, i32) {
    %c0_i32 = arith.constant 0 : i32
    %c0_i32_0 = arith.constant 0 : i32
    %c0_i32_1 = arith.constant 0 : i32
    return %c0_i32, %c0_i32_0 : i32, i32
  }
  func.func @transform_5(%arg0: i32) -> (i32, i32) {
    %c0_i32 = arith.constant 0 : i32
    %c0_i32_0 = arith.constant 0 : i32
    return %arg0, %c0_i32 : i32, i32
  }
}

</mosaic_0001>

<bundles_post_ra>
// kernel: tile.13
= control target key start
LH: loop header
LB: loop body
LE: loop exit
PB: predicated region body
PF: predicated region fallthrough
CT: control target
= control target key end

     0   :  { %s40_s0 = inlined_call_operand.vmem [shape: f32[32], index: 0, kind: input, shape index: {}]   ;;  %s41_s1 = inlined_call_operand.vmem [shape: f32[32,32], index: 1, kind: output, shape index: {}]  }
   0x1   :  { %v4_v0 = vld [vmem:[%s40_s0] ss:$0 sm:$0xff] }
   0x2   :  { %5 = vst [vmem:[%s41_s1] sm:$0xff] %v4_v0  ;;  %12 = vst [vmem:[%s41_s1 + $0x8] sm:$0xff] %v4_v0 }
   0x3   :  { %13 = vst [vmem:[%s41_s1 + $0x10] sm:$0xff] %v4_v0  ;;  %14 = vst [vmem:[%s41_s1 + $0x18] sm:$0xff] %v4_v0 }

// kernel: tile.14
= control target key start
LH: loop header
LB: loop body
LE: loop exit
PB: predicated region body
PF: predicated region fallthrough
CT: control target
= control target key end

     0   :  { %s102_s8 = smov 96   ;;  %vm3_vm0 = vcmask 261120   ;;  %s104_s15 = smov 64   ;;  %vm10_vm1 = vcmask 1048320   ;;  %vm17_vm2 = vcmask 785920   ;;  %vm24_vm3 = vcmask 523520   ;;  %s151_s0 = inlined_call_operand.vmem [shape: f32[32,32], index: 0, kind: input, shape index: {}]   ;;  %s152_s1 = inlined_call_operand.vmem [shape: f32[1,1024], index: 1, kind: output, shape index: {}]  }
   0x1   :  { %v89_v0 = vld [vmem:[%s151_s0 + $0x3] ss:$4 sm:$0xff]   ;;  %v91_v1 = vld [vmem:[%s151_s0 + $0x1] ss:$4 sm:$0xff]   ;;  %v2_v2 = vld [vmem:[%s151_s0] ss:$4 sm:$0xff]  }
   0x2   :  { %8 = vrot.lane.b32.xlu0 %v89_v0, %s102_s8  ;;  %v90_v3 = vld [vmem:[%s151_s0 + $0x2] ss:$4 sm:$0xff]   ;;  %s103_s0 = smov 32   ;;  %4 = vst.msk [vmem:[#allocation0] ss:$8 sm:$0xf] %vm3_vm0, %v2_v2  }
   0x3   :  { %22 = vrot.lane.b32.xlu1 %v91_v1, %s103_s0  ;;  %5 = vst.msk [vmem:[#allocation0] ss:$8 sm:$0xf0] %vm3_vm0, %v2_v2  }
   0x6   :  { %15 = vrot.lane.b32.xlu0 %v90_v3, %s104_s15 }
  0x74   :  { %v9_v4 = vpop.permute.xlu0 %8  }
  0x75   :  { %11 = vst.msk [vmem:[#allocation0] ss:$8 sm:$0xf] %vm10_vm1, %v9_v4   ;;  %12 = vst.msk [vmem:[#allocation0] ss:$8 sm:$0xf0] %vm10_vm1, %v9_v4   ;;  %v23_v5 = vpop.permute.xlu1 %22  }
  0x78   :  { %v16_v6 = vpop.permute.xlu0 %15  }
  0x79   :  { %18 = vst.msk [vmem:[#allocation0] ss:$8 sm:$0xf] %vm17_vm2, %v16_v6   ;;  %19 = vst.msk [vmem:[#allocation0] ss:$8 sm:$0xf0] %vm17_vm2, %v16_v6  }
  0x7a   :  { %25 = vst.msk [vmem:[#allocation0] ss:$8 sm:$0xf] %vm24_vm3, %v23_v5   ;;  %26 = vst.msk [vmem:[#allocation0] ss:$8 sm:$0xf0] %vm24_vm3, %v23_v5  }
  0x81   :  { %v31_v7 = vld [vmem:[#allocation0] sm:$0x1]  ;;  %v36_v8 = vld [vmem:[#allocation0 + $0x8] sm:$0x1]  ;;  %v42_v9 = vld [vmem:[#allocation0 + $0x10] sm:$0x1] }
  0x82   :  { %34 = vst [vmem:[%s152_s1] sm:$0x1] %v31_v7  ;;  %92 = vst [vmem:[%s152_s1 + $0x1] sm:$0x1] %v36_v8  ;;  %v49_v10 = vld [vmem:[#allocation0 + $0x18] sm:$0x1] }
  0x83   :  { %93 = vst [vmem:[%s152_s1 + $0x2] sm:$0x1] %v42_v9  ;;  %v56_v11 = vld [vmem:[#allocation0 + $0x20] sm:$0x1]  ;;  %v63_v12 = vld [vmem:[#allocation0 + $0x28] sm:$0x1] }
  0x84   :  { %94 = vst [vmem:[%s152_s1 + $0x3] sm:$0x1] %v49_v10  ;;  %95 = vst [vmem:[%s152_s1 + $0x4] sm:$0x1] %v56_v11  ;;  %v70_v13 = vld [vmem:[#allocation0 + $0x30] sm:$0x1] }
  0x85   :  { %96 = vst [vmem:[%s152_s1 + $0x5] sm:$0x1] %v63_v12  ;;  %v77_v14 = vld [vmem:[#allocation0 + $0x38] sm:$0x1]  ;;  %97 = vst [vmem:[%s152_s1 + $0x6] sm:$0x1] %v70_v13 }
  0x86   :  { %98 = vst [vmem:[%s152_s1 + $0x7] sm:$0x1] %v77_v14 }

// kernel: tile.18
= control target key start
LH: loop header
LB: loop body
LE: loop exit
PB: predicated region body
PF: predicated region fallthrough
CT: control target
= control target key end

     0   :  { %s40_s0 = inlined_call_operand.vmem [shape: f32[4], index: 0, kind: input, shape index: {}]   ;;  %s41_s1 = inlined_call_operand.vmem [shape: f32[32,4], index: 1, kind: output, shape index: {}]  }
   0x1   :  { %v4_v0 = vld [vmem:[%s40_s0] ss:$0 sm:$0xff] }
   0x2   :  { %5 = vst [vmem:[%s41_s1] sm:$0xff] %v4_v0  ;;  %12 = vst [vmem:[%s41_s1 + $0x8] sm:$0xff] %v4_v0 }
   0x3   :  { %13 = vst [vmem:[%s41_s1 + $0x10] sm:$0xff] %v4_v0  ;;  %14 = vst [vmem:[%s41_s1 + $0x18] sm:$0xff] %v4_v0 }

// kernel: tile.19
= control target key start
LH: loop header
LB: loop body
LE: loop exit
PB: predicated region body
PF: predicated region fallthrough
CT: control target
= control target key end

     0   :  { %s261_s10 = smov 124   ;;  %s262_s11 = smov 116   ;;  %vm3_vm0 = vcmask 31744   ;;  %vm9_vm1 = vcmask 1048544   ;;  %vm15_vm2 = vcmask 1015744   ;;  %vm21_vm3 = vcmask 982944   ;;  %s401_s0 = inlined_call_operand.vmem [shape: f32[32,4], index: 0, kind: input, shape index: {}]   ;;  %s402_s1 = inlined_call_operand.vmem [shape: f32[1,128], index: 1, kind: output, shape index: {}]  }
   0x1   :  { %v199_v0 = vld [vmem:[%s401_s0 + $0x1f] sm:$0x1]   ;;  %v201_v1 = vld [vmem:[%s401_s0 + $0x1d] sm:$0x1]   ;;  %v200_v2 = vld [vmem:[%s401_s0 + $0x1e] sm:$0x1]  }
   0x2   :  { %7 = vrot.lane.b32.xlu0 %v199_v0, %s261_s10  ;;  %19 = vrot.lane.b32.xlu1 %v201_v1, %s262_s11  ;;  %v202_v3 = vld [vmem:[%s401_s0 + $0x1c] sm:$0x1]   ;;  %s263_s16 = smov 120   ;;  %s264_s17 = smov 112   ;;  %v203_v4 = vld [vmem:[%s401_s0 + $0x1b] sm:$0x1]  }
   0x3   :  { %v204_v5 = vld [vmem:[%s401_s0 + $0x1a] sm:$0x1]   ;;  %s265_s22 = smov 108   ;;  %s266_s23 = smov 104   ;;  %v205_v6 = vld [vmem:[%s401_s0 + $0x19] sm:$0x1]  }
   0x4   :  { %v206_v7 = vld [vmem:[%s401_s0 + $0x18] sm:$0x1]   ;;  %s267_s28 = smov 100   ;;  %s268_s29 = smov 96   ;;  %v207_v8 = vld [vmem:[%s401_s0 + $0x17] sm:$0x1]  }
   0x5   :  { %v208_v9 = vld [vmem:[%s401_s0 + $0x16] sm:$0x1]   ;;  %v2_v10 = vld [vmem:[%s401_s0] sm:$0x1]   ;;  %s269_s7 = smov 92   ;;  %s270_s8 = smov 88  }
   0x6   :  { %13 = vrot.lane.b32.xlu0 %v200_v2, %s263_s16  ;;  %25 = vrot.lane.b32.xlu1 %v202_v3, %s264_s17  ;;  %4 = vst.msk [vmem:[#allocation0] sm:$0x1] %vm3_vm0, %v2_v10   ;;  %v209_v11 = vld [vmem:[%s401_s0 + $0x15] sm:$0x1]   ;;  %v210_v12 = vld [vmem:[%s401_s0 + $0x14] sm:$0x1]  }
   0x7   :  { %s271_s13 = smov 84   ;;  %s272_s14 = smov 80   ;;  %v211_v13 = vld [vmem:[%s401_s0 + $0x13] sm:$0x1]   ;;  %v212_v14 = vld [vmem:[%s401_s0 + $0x12] sm:$0x1]  }
   0x8   :  { %s273_s19 = smov 76   ;;  %s274_s20 = smov 72   ;;  %v213_v15 = vld [vmem:[%s401_s0 + $0x11] sm:$0x1]   ;;  %v214_v16 = vld [vmem:[%s401_s0 + $0x10] sm:$0x1]  }
   0x9   :  { %s275_s25 = smov 68   ;;  %s276_s26 = smov 64   ;;  %v215_v17 = vld [vmem:[%s401_s0 + $0xf] sm:$0x1]   ;;  %v216_v18 = vld [vmem:[%s401_s0 + $0xe] sm:$0x1]  }
   0xa   :  { %31 = vrot.lane.b32.xlu0 %v203_v4, %s265_s22  ;;  %37 = vrot.lane.b32.xlu1 %v204_v5, %s266_s23  ;;  %s277_s2 = smov 60   ;;  %s278_s3 = smov 56   ;;  %v217_v19 = vld [vmem:[%s401_s0 + $0xd] sm:$0x1]   ;;  %v218_v20 = vld [vmem:[%s401_s0 + $0xc] sm:$0x1]  }
   0xb   :  { %s280_s9 = smov 48   ;;  %v219_v21 = vld [vmem:[%s401_s0 + $0xb] sm:$0x1]   ;;  %v220_v22 = vld [vmem:[%s401_s0 + $0xa] sm:$0x1]   ;;  %s282_s15 = smov 40  }
   0xc   :  { %v221_v23 = vld [vmem:[%s401_s0 + $0x9] sm:$0x1]   ;;  %v222_v24 = vld [vmem:[%s401_s0 + $0x8] sm:$0x1]   ;;  %s284_s21 = smov 32   ;;  %s286_s27 = smov 24  }
   0xd   :  { %v223_v25 = vld [vmem:[%s401_s0 + $0x7] sm:$0x1]   ;;  %v224_v26 = vld [vmem:[%s401_s0 + $0x6] sm:$0x1]   ;;  %v225_v27 = vld [vmem:[%s401_s0 + $0x5] sm:$0x1]  }
   0xe   :  { %43 = vrot.lane.b32.xlu0 %v205_v6, %s267_s28  ;;  %49 = vrot.lane.b32.xlu1 %v206_v7, %s268_s29  ;;  %v226_v28 = vld [vmem:[%s401_s0 + $0x4] sm:$0x1]   ;;  %s288_s4 = smov 16   ;;  %v227_v29 = vld [vmem:[%s401_s0 + $0x3] sm:$0x1]   ;;  %s290_s10 = smov 8  }
   0xf   :  { %v228_v30 = vld [vmem:[%s401_s0 + $0x2] sm:$0x1]   ;;  %v229_v31 = vld [vmem:[%s401_s0 + $0x1] sm:$0x1]   ;;  %s291_s0 = smov 4   ;;  %vm27_vm4 = vcmask 950144  }
  0x10   :  { %vm33_vm5 = vcmask 917344   ;;  %vm39_vm6 = vcmask 884544   ;;  %vm45_vm7 = vcmask 851744   ;;  %vm51_vm8 = vcmask 818944  }
  0x11   :  { %vm57_vm9 = vcmask 786144   ;;  %vm63_vm10 = vcmask 753344   ;;  %vm69_vm11 = vcmask 720544   ;;  %vm75_vm12 = vcmask 687744  }
  0x12   :  { %55 = vrot.lane.b32.xlu0 %v207_v8, %s269_s7  ;;  %61 = vrot.lane.b32.xlu1 %v208_v9, %s270_s8  ;;  %s279_s8 = smov 52   ;;  %vm81_vm13 = vcmask 654944   ;;  %vm87_vm14 = vcmask 622144   ;;  %vm93_vm15 = vcmask 589344   ;;  %vm99_vm0 = vcmask 556544  }
  0x16   :  { %67 = vrot.lane.b32.xlu0 %v209_v11, %s271_s13  ;;  %73 = vrot.lane.b32.xlu1 %v210_v12, %s272_s14  ;;  %s281_s14 = smov 44  }
  0x1a   :  { %79 = vrot.lane.b32.xlu0 %v211_v13, %s273_s19  ;;  %85 = vrot.lane.b32.xlu1 %v212_v14, %s274_s20  ;;  %s283_s20 = smov 36  }
  0x1e   :  { %91 = vrot.lane.b32.xlu0 %v213_v15, %s275_s25  ;;  %97 = vrot.lane.b32.xlu1 %v214_v16, %s276_s26  ;;  %s285_s26 = smov 28  }
  0x22   :  { %103 = vrot.lane.b32.xlu0 %v215_v17, %s277_s2  ;;  %109 = vrot.lane.b32.xlu1 %v216_v18, %s278_s3  ;;  %s287_s3 = smov 20  }
  0x26   :  { %115 = vrot.lane.b32.xlu0 %v217_v19, %s279_s8  ;;  %121 = vrot.lane.b32.xlu1 %v218_v20, %s280_s9  ;;  %s289_s9 = smov 12  }
  0x2a   :  { %127 = vrot.lane.b32.xlu0 %v219_v21, %s281_s14  ;;  %133 = vrot.lane.b32.xlu1 %v220_v22, %s282_s15 }
  0x2e   :  { %139 = vrot.lane.b32.xlu0 %v221_v23, %s283_s20  ;;  %145 = vrot.lane.b32.xlu1 %v222_v24, %s284_s21 }
  0x32   :  { %151 = vrot.lane.b32.xlu0 %v223_v25, %s285_s26  ;;  %157 = vrot.lane.b32.xlu1 %v224_v26, %s286_s27 }
  0x36   :  { %163 = vrot.lane.b32.xlu0 %v225_v27, %s287_s3  ;;  %169 = vrot.lane.b32.xlu1 %v226_v28, %s288_s4 }
  0x3a   :  { %175 = vrot.lane.b32.xlu0 %v227_v29, %s289_s9  ;;  %181 = vrot.lane.b32.xlu1 %v228_v30, %s290_s10 }
  0x3e   :  { %187 = vrot.lane.b32.xlu0 %v229_v31, %s291_s0 }
  0x74   :  { %v8_v32 = vpop.permute.xlu0 %7   ;;  %v20_v33 = vpop.permute.xlu1 %19  }
  0x75   :  { %10 = vst.msk [vmem:[#allocation0] sm:$0x1] %vm9_vm1, %v8_v32   ;;  %vm105_vm1 = vcmask 523744  }
  0x78   :  { %v14_v34 = vpop.permute.xlu0 %13   ;;  %v26_v35 = vpop.permute.xlu1 %25  }
  0x79   :  { %16 = vst.msk [vmem:[#allocation0] sm:$0x1] %vm15_vm2, %v14_v34   ;;  %vm111_vm2 = vcmask 490944  }
  0x7a   :  { %22 = vst.msk [vmem:[#allocation0] sm:$0x1] %vm21_vm3, %v20_v33   ;;  %vm117_vm3 = vcmask 458144  }
  0x7b   :  { %28 = vst.msk [vmem:[#allocation0] sm:$0x1] %vm27_vm4, %v26_v35   ;;  %vm123_vm4 = vcmask 425344  }
  0x7c   :  { %v32_v36 = vpop.permute.xlu0 %31   ;;  %v38_v37 = vpop.permute.xlu1 %37  }
  0x7d   :  { %34 = vst.msk [vmem:[#allocation0] sm:$0x1] %vm33_vm5, %v32_v36   ;;  %vm129_vm5 = vcmask 392544  }
  0x7e   :  { %40 = vst.msk [vmem:[#allocation0] sm:$0x1] %vm39_vm6, %v38_v37   ;;  %vm135_vm6 = vcmask 359744  }
  0x80   :  { %v44_v38 = vpop.permute.xlu0 %43   ;;  %v50_v39 = vpop.permute.xlu1 %49  }
  0x81   :  { %46 = vst.msk [vmem:[#allocation0] sm:$0x1] %vm45_vm7, %v44_v38   ;;  %vm141_vm7 = vcmask 326944  }
  0x82   :  { %52 = vst.msk [vmem:[#allocation0] sm:$0x1] %vm51_vm8, %v50_v39   ;;  %vm147_vm8 = vcmask 294144  }
  0x84   :  { %v56_v40 = vpop.permute.xlu0 %55   ;;  %v62_v41 = vpop.permute.xlu1 %61  }
  0x85   :  { %58 = vst.msk [vmem:[#allocation0] sm:$0x1] %vm57_vm9, %v56_v40   ;;  %vm153_vm9 = vcmask 261344  }
  0x86   :  { %64 = vst.msk [vmem:[#allocation0] sm:$0x1] %vm63_vm10, %v62_v41   ;;  %vm159_vm10 = vcmask 228544  }
  0x88   :  { %v68_v42 = vpop.permute.xlu0 %67   ;;  %v74_v43 = vpop.permute.xlu1 %73  }
  0x89   :  { %70 = vst.msk [vmem:[#allocation0] sm:$0x1] %vm69_vm11, %v68_v42   ;;  %vm165_vm11 = vcmask 195744  }
  0x8a   :  { %76 = vst.msk [vmem:[#allocation0] sm:$0x1] %vm75_vm12, %v74_v43   ;;  %vm171_vm12 = vcmask 162944  }
  0x8c   :  { %v80_v44 = vpop.permute.xlu0 %79   ;;  %v86_v45 = vpop.permute.xlu1 %85  }
  0x8d   :  { %82 = vst.msk [vmem:[#allocation0] sm:$0x1] %vm81_vm13, %v80_v44   ;;  %vm177_vm13 = vcmask 130144  }
  0x8e   :  { %88 = vst.msk [vmem:[#allocation0] sm:$0x1] %vm87_vm14, %v86_v45   ;;  %vm183_vm14 = vcmask 97344  }
  0x90   :  { %v92_v46 = vpop.permute.xlu0 %91   ;;  %v98_v47 = vpop.permute.xlu1 %97  }
  0x91   :  { %94 = vst.msk [vmem:[#allocation0] sm:$0x1] %vm93_vm15, %v92_v46   ;;  %vm189_vm15 = vcmask 64544  }
  0x92   :  { %100 = vst.msk [vmem:[#allocation0] sm:$0x1] %vm99_vm0, %v98_v47  }
  0x94   :  { %v104_v48 = vpop.permute.xlu0 %103   ;;  %v110_v49 = vpop.permute.xlu1 %109  }
  0x95   :  { %106 = vst.msk [vmem:[#allocation0] sm:$0x1] %vm105_vm1, %v104_v48  }
  0x96   :  { %112 = vst.msk [vmem:[#allocation0] sm:$0x1] %vm111_vm2, %v110_v49  }
  0x98   :  { %v116_v50 = vpop.permute.xlu0 %115   ;;  %v122_v51 = vpop.permute.xlu1 %121  }
  0x99   :  { %118 = vst.msk [vmem:[#allocation0] sm:$0x1] %vm117_vm3, %v116_v50  }
  0x9a   :  { %124 = vst.msk [vmem:[#allocation0] sm:$0x1] %vm123_vm4, %v122_v51  }
  0x9c   :  { %v128_v52 = vpop.permute.xlu0 %127   ;;  %v134_v53 = vpop.permute.xlu1 %133  }
  0x9d   :  { %130 = vst.msk [vmem:[#allocation0] sm:$0x1] %vm129_vm5, %v128_v52  }
  0x9e   :  { %136 = vst.msk [vmem:[#allocation0] sm:$0x1] %vm135_vm6, %v134_v53  }
  0xa0   :  { %v140_v54 = vpop.permute.xlu0 %139   ;;  %v146_v55 = vpop.permute.xlu1 %145  }
  0xa1   :  { %142 = vst.msk [vmem:[#allocation0] sm:$0x1] %vm141_vm7, %v140_v54  }
  0xa2   :  { %148 = vst.msk [vmem:[#allocation0] sm:$0x1] %vm147_vm8, %v146_v55  }
  0xa4   :  { %v152_v56 = vpop.permute.xlu0 %151   ;;  %v158_v57 = vpop.permute.xlu1 %157  }
  0xa5   :  { %154 = vst.msk [vmem:[#allocation0] sm:$0x1] %vm153_vm9, %v152_v56  }
  0xa6   :  { %160 = vst.msk [vmem:[#allocation0] sm:$0x1] %vm159_vm10, %v158_v57  }
  0xa8   :  { %v164_v58 = vpop.permute.xlu0 %163   ;;  %v170_v59 = vpop.permute.xlu1 %169  }
  0xa9   :  { %166 = vst.msk [vmem:[#allocation0] sm:$0x1] %vm165_vm11, %v164_v58  }
  0xaa   :  { %172 = vst.msk [vmem:[#allocation0] sm:$0x1] %vm171_vm12, %v170_v59  }
  0xac   :  { %v176_v60 = vpop.permute.xlu0 %175   ;;  %v182_v61 = vpop.permute.xlu1 %181  }
  0xad   :  { %178 = vst.msk [vmem:[#allocation0] sm:$0x1] %vm177_vm13, %v176_v60  }
  0xae   :  { %184 = vst.msk [vmem:[#allocation0] sm:$0x1] %vm183_vm14, %v182_v61  }
  0xb0   :  { %v188_v62 = vpop.permute.xlu0 %187  }
  0xb1   :  { %190 = vst.msk [vmem:[#allocation0] sm:$0x1] %vm189_vm15, %v188_v62  }
  0xb8   :  { %v195_v63 = vld [vmem:[#allocation0] sm:$0x1] }
  0xb9   :  { %198 = vst [vmem:[%s402_s1] sm:$0x1] %v195_v63 }

// kernel: mlpc_encoder_forward.1
= control target key start
LH: loop header
LB: loop body
LE: loop exit
PB: predicated region body
PF: predicated region fallthrough
CT: control target
= control target key end

     0   :  { %10 = vsyncpa [#allocation3], 0  ;;  %s2353_s0 = inlined_call_operand.vmem [shape: f32[16,128], index: 0, kind: input, shape index: {}]   ;;  %s2354_s1 = inlined_call_operand.vmem [shape: f32[128,1024], index: 1, kind: input, shape index: {}]   ;;  %s2355_s2 = inlined_call_operand.vmem [shape: f32[1,1024], index: 2, kind: input, shape index: {}]   ;;  %s2356_s3 = inlined_call_operand.vmem [shape: f32[1024,128], index: 3, kind: input, shape index: {}]   ;;  %s2357_s4 = inlined_call_operand.vmem [shape: f32[1,128], index: 4, kind: input, shape index: {}]   ;;  %s2358_s5 = inlined_call_operand.hbm [shape: f32[16,128], index: 5, kind: output, shape index: {}]  }
   0x1   :  { %12 = vsyncpa [#allocation3 + $0x1], 0  ;;  %s1457_s18 = smov 0   ;;  %s1459_s19 = smov 0  }
   0x2   :  { %s1461_s20 = smov 0   ;;  %s1463_s21 = smov 0  }
   0x3 LB: > { %s1478_s22 = sadd.s32 4294967295, %s1423_s21   ;;  %s1172_s23 = sadd.s32 4294967294, %s1423_s21   ;;  %s1423_s21 = sphi %s1463_s21, %s2364_s21   ;;  %s1419_s20 = sphi %s1461_s20, %s2363_s20   ;;  %s1415_s19 = sphi %s1459_s19, %s2362_s19   ;;  %s1411_s18 = sphi %s1457_s18, %s2361_s18  }
   0x4   : > { %s1482_s24 = sadd.s32 1, %s1423_s21   ;;  %s135_s25 = sadd.s32 1, %s1419_s20 }
   0x5   : > { %s132_s26 = ssub.s32 %s1423_s21, %s1482_s24  ;;  %p145_p0 = scmp.ne.s32.totalorder %s1419_s20, %s1415_s19 }
   0x6   : > { %p133_p1 = scmp.eq.s32.totalorder %s132_s26, 0  ;;  %p146_p2 = scmp.eq.s32.totalorder %s1478_s22, 1 }
   0x7   : > { %p151_p3 = scmp.ne.s32.totalorder %s1415_s19, %s1411_s18  ;;  %p152_p4 = scmp.eq.s32.totalorder %s1172_s23, 1 }
   0x8   : > { %s1493_s27 = scalar_select %p133_p1, %s1419_s20, %s135_s25  }
   0x9   : > { %p1495_p5 = por %p146_p2, %p145_p0  ;;  %p1499_p6 = por %p152_p4, %p151_p3 }
   0xa   : > { %p1175_p7 = scmp.ge.s32.totalorder %s1423_s21, 1  ;;  %p189_p8 = scmp.lt.s32.totalorder %s1423_s21, 3 }
   0xc   : > { %p190_p9 = pnand %p1175_p7, %p189_p8 }
   0xd   : > { %p216_p10 = scmp.lt.s32.totalorder (!%p190_p9), %s1478_s22, 1  ;;  %s213_s13 = sand.u32 (!%p190_p9), 1, %s1415_s19  }
   0xe   : > { %193 = sbr.rel (%p190_p9) target bundleno = 501 (0x1f5), region = 40  ;;  %s1180_s16 = sshll.u32 (!%p190_p9), %s1478_s22, 7 }
   0xf   : > { %s1100_s8 = scalar_lea.sflag (!%p190_p9), [#allocation3], %s213_s13  ;;  %s1426_s10 = smov (!%p190_p9), [#allocation2]  }
  0x10   : > { %s1367_s11 = sshll.u32 (!%p190_p9), %s1426_s10, 4  ;;  %s1368_s11 = int_to_ptr.vmem [resolvable:$false] %s1367_s11 }
  0x13   : > { %v342_v0 = vld [vmem:[%s2354_s1 + $0x3c8] sm:$0xff]  ;;  %v344_v1 = vld [vmem:[%s2354_s1 + $0x3d8] sm:$0xff]  ;;  %v341_v2 = vld [vmem:[%s2354_s1 + $0x3c0] sm:$0xff]  ;;  %s1653_s30 = scalar_select %p216_p10, %s1478_s22, 1 }
  0x14   : > { %391 = vmatprep.subr.mxu0 %v342_v0  ;;  %462 = vmatprep.subr.mxu1 %v344_v1  ;;  %v343_v3 = vld [vmem:[%s2354_s1 + $0x3d0] sm:$0xff]  ;;  %v334_v4 = vld [vmem:[%s2354_s1 + $0x388] sm:$0xff]  ;;  %v336_v5 = vld [vmem:[%s2354_s1 + $0x398] sm:$0xff]  ;;  %v1425_v1 = vmov 0.0   ;;  %s1369_s22 = scalar_lea.vmem %s1368_s11, 256 }
  0x15   : > { %392 = vmatpush1.msra.mxu0 %v341_v2  ;;  %463 = vmatpush1.msra.mxu1 %v343_v3  ;;  %v333_v6 = vld [vmem:[%s2354_s1 + $0x380] sm:$0xff]  ;;  %v335_v7 = vld [vmem:[%s2354_s1 + $0x390] sm:$0xff]  ;;  %v326_v8 = vld [vmem:[%s2354_s1 + $0x348] sm:$0xff]  ;;  %s1177_s7 = sshll.u32 %s1653_s30, 3  ;;  %s1176_s30 = sshll.u32 %s213_s13, 3 }
  0x16   : > { %393 = vmatprep.subr.mxu0 %v334_v4  ;;  %464 = vmatprep.subr.mxu1 %v336_v5  ;;  %v328_v9 = vld [vmem:[%s2354_s1 + $0x358] sm:$0xff]  ;;  %v325_v10 = vld [vmem:[%s2354_s1 + $0x340] sm:$0xff]  ;;  %v327_v11 = vld [vmem:[%s2354_s1 + $0x350] sm:$0xff]  ;;  %s219_s6 = scalar_lea.vmem %s2353_s0, %s1177_s7  ;;  %s215_s17 = scalar_lea.vmem [#allocation2], %s1176_s30 }
  0x17   : > { %394 = vmatpush1.msra.mxu0 %v333_v6  ;;  %465 = vmatpush1.msra.mxu1 %v335_v7  ;;  %v318_v12 = vld [vmem:[%s2354_s1 + $0x308] sm:$0xff]  ;;  %v320_v13 = vld [vmem:[%s2354_s1 + $0x318] sm:$0xff]  ;;  %v317_v14 = vld [vmem:[%s2354_s1 + $0x300] sm:$0xff]  ;;  %s1113_s23 = sshll.u32 %s215_s17, 4  ;;  %s1114_s23 = int_to_ptr.vmem [resolvable:$true] %s1113_s23 }
  0x18   : > { %395 = vmatprep.subr.mxu0 %v326_v8  ;;  %466 = vmatprep.subr.mxu1 %v328_v9  ;;  %v319_v15 = vld [vmem:[%s2354_s1 + $0x310] sm:$0xff]  ;;  %v310_v16 = vld [vmem:[%s2354_s1 + $0x2c8] sm:$0xff]  ;;  %v312_v17 = vld [vmem:[%s2354_s1 + $0x2d8] sm:$0xff]  ;;  %s1363_s9 = scalar_lea.vmem %s1114_s23, 128  ;;  %p1370_p0 = scmp.lt.s32.totalorder %s1114_s23, %s1368_s11 }
  0x19   : > { %396 = vmatpush1.msra.mxu0 %v325_v10  ;;  %467 = vmatpush1.msra.mxu1 %v327_v11  ;;  %v309_v18 = vld [vmem:[%s2354_s1 + $0x2c0] sm:$0xff]  ;;  %v311_v19 = vld [vmem:[%s2354_s1 + $0x2d0] sm:$0xff]  ;;  %v302_v20 = vld [vmem:[%s2354_s1 + $0x288] sm:$0xff]  ;;  %p1364_p11 = scmp.ne.s32.totalorder %s1114_s23, %s1363_s9  ;;  %p1371_p1 = scmp.lt.s32.totalorder %s1369_s22, %s1363_s9 }
  0x1a   : > { %397 = vmatprep.subr.mxu0 %v318_v12  ;;  %468 = vmatprep.subr.mxu1 %v320_v13  ;;  %v304_v21 = vld [vmem:[%s2354_s1 + $0x298] sm:$0xff]  ;;  %v301_v22 = vld [vmem:[%s2354_s1 + $0x280] sm:$0xff]  ;;  %v303_v23 = vld [vmem:[%s2354_s1 + $0x290] sm:$0xff] }
  0x1b   : > { %398 = vmatpush1.msra.mxu0 %v317_v14  ;;  %469 = vmatpush1.msra.mxu1 %v319_v15  ;;  %v294_v24 = vld [vmem:[%s2354_s1 + $0x248] sm:$0xff]  ;;  %v296_v25 = vld [vmem:[%s2354_s1 + $0x258] sm:$0xff]  ;;  %v293_v26 = vld [vmem:[%s2354_s1 + $0x240] sm:$0xff]  ;;  %p1365_p12 = pnand %p1364_p11, %p1495_p5  ;;  %p1372_p2 = por %p1371_p1, %p1370_p0 }
  0x1c   : > { %399 = vmatprep.subr.mxu0 %v310_v16  ;;  %470 = vmatprep.subr.mxu1 %v312_v17  ;;  %v295_v27 = vld [vmem:[%s2354_s1 + $0x250] sm:$0xff]  ;;  %v286_v28 = vld [vmem:[%s2354_s1 + $0x208] sm:$0xff]  ;;  %v288_v29 = vld [vmem:[%s2354_s1 + $0x218] sm:$0xff] }
  0x1d   : > { %400 = vmatpush1.msra.mxu0 %v309_v18  ;;  %471 = vmatpush1.msra.mxu1 %v311_v19  ;;  %v285_v30 = vld [vmem:[%s2354_s1 + $0x200] sm:$0xff]  ;;  %v287_v31 = vld [vmem:[%s2354_s1 + $0x210] sm:$0xff]  ;;  %v278_v32 = vld [vmem:[%s2354_s1 + $0x1c8] sm:$0xff]  ;;  %p1366_p13 = pneg %p1365_p12 }
  0x1e   : > { %401 = vmatprep.subr.mxu0 %v302_v20  ;;  %472 = vmatprep.subr.mxu1 %v304_v21  ;;  %v280_v33 = vld [vmem:[%s2354_s1 + $0x1d8] sm:$0xff]  ;;  %v277_v34 = vld [vmem:[%s2354_s1 + $0x1c0] sm:$0xff]  ;;  %v279_v35 = vld [vmem:[%s2354_s1 + $0x1d0] sm:$0xff] }
  0x1f   : > { %402 = vmatpush1.msra.mxu0 %v301_v22  ;;  %473 = vmatpush1.msra.mxu1 %v303_v23  ;;  %v270_v36 = vld [vmem:[%s2354_s1 + $0x188] sm:$0xff]  ;;  %v272_v37 = vld [vmem:[%s2354_s1 + $0x198] sm:$0xff]  ;;  %v269_v38 = vld [vmem:[%s2354_s1 + $0x180] sm:$0xff]  ;;  %p1373_p3 = pnand %p1372_p2, %p1366_p13 }
  0x20   : > { %403 = vmatprep.subr.mxu0 %v294_v24  ;;  %474 = vmatprep.subr.mxu1 %v296_v25  ;;  %v271_v39 = vld [vmem:[%s2354_s1 + $0x190] sm:$0xff]  ;;  %v262_v40 = vld [vmem:[%s2354_s1 + $0x148] sm:$0xff]  ;;  %v264_v41 = vld [vmem:[%s2354_s1 + $0x158] sm:$0xff] }
  0x21   : > { %404 = vmatpush1.msra.mxu0 %v293_v26  ;;  %475 = vmatpush1.msra.mxu1 %v295_v27  ;;  %v261_v42 = vld [vmem:[%s2354_s1 + $0x140] sm:$0xff]  ;;  %v263_v43 = vld [vmem:[%s2354_s1 + $0x150] sm:$0xff]  ;;  %v254_v44 = vld [vmem:[%s2354_s1 + $0x108] sm:$0xff] }
  0x22   : > { %405 = vmatprep.subr.mxu0 %v286_v28  ;;  %476 = vmatprep.subr.mxu1 %v288_v29  ;;  %v256_v45 = vld [vmem:[%s2354_s1 + $0x118] sm:$0xff]  ;;  %v253_v46 = vld [vmem:[%s2354_s1 + $0x100] sm:$0xff]  ;;  %v255_v47 = vld [vmem:[%s2354_s1 + $0x110] sm:$0xff] }
  0x23   : > { %406 = vmatpush1.msra.mxu0 %v285_v30  ;;  %477 = vmatpush1.msra.mxu1 %v287_v31  ;;  %v246_v48 = vld [vmem:[%s2354_s1 + $0xc8] sm:$0xff]  ;;  %v248_v49 = vld [vmem:[%s2354_s1 + $0xd8] sm:$0xff]  ;;  %v245_v50 = vld [vmem:[%s2354_s1 + $0xc0] sm:$0xff] }
  0x24   : > { %407 = vmatprep.subr.mxu0 %v278_v32  ;;  %478 = vmatprep.subr.mxu1 %v280_v33  ;;  %v247_v51 = vld [vmem:[%s2354_s1 + $0xd0] sm:$0xff]  ;;  %v238_v52 = vld [vmem:[%s2354_s1 + $0x88] sm:$0xff]  ;;  %v240_v53 = vld [vmem:[%s2354_s1 + $0x98] sm:$0xff] }
  0x25   : > { %408 = vmatpush1.msra.mxu0 %v277_v34  ;;  %479 = vmatpush1.msra.mxu1 %v279_v35  ;;  %v237_v54 = vld [vmem:[%s2354_s1 + $0x80] sm:$0xff]  ;;  %v239_v55 = vld [vmem:[%s2354_s1 + $0x90] sm:$0xff]  ;;  %v230_v56 = vld [vmem:[%s2354_s1 + $0x48] sm:$0xff] }
  0x26   : > { %409 = vmatprep.subr.mxu0 %v270_v36  ;;  %480 = vmatprep.subr.mxu1 %v272_v37  ;;  %v232_v57 = vld [vmem:[%s2354_s1 + $0x58] sm:$0xff]  ;;  %v229_v58 = vld [vmem:[%s2354_s1 + $0x40] sm:$0xff]  ;;  %v231_v59 = vld [vmem:[%s2354_s1 + $0x50] sm:$0xff] }
  0x27   : > { %410 = vmatpush1.msra.mxu0 %v269_v38  ;;  %481 = vmatpush1.msra.mxu1 %v271_v39  ;;  %v222_v60 = vld [vmem:[%s2354_s1 + $0x8] sm:$0xff]  ;;  %v224_v61 = vld [vmem:[%s2354_s1 + $0x18] sm:$0xff]  ;;  %v221_v62 = vld [vmem:[%s2354_s1] sm:$0xff] }
  0x28   : > { %411 = vmatprep.subr.mxu0 %v262_v40  ;;  %482 = vmatprep.subr.mxu1 %v264_v41  ;;  %v223_v63 = vld [vmem:[%s2354_s1 + $0x10] sm:$0xff]  ;;  %v1707_v0 = vld [vmem:[%s219_s6] sm:$0xff]  ;;  %v346_v2 = vld [vmem:[%s2354_s1 + $0x3e8] sm:$0xff]  ;;  %s1111_s6 = scalar_lea.hbm %s2358_s5, %s1180_s16 }
  0x29   : > { %412 = vmatpush1.msra.mxu0 %v261_v42  ;;  %483 = vmatpush1.msra.mxu1 %v263_v43  ;;  %v348_v3 = vld [vmem:[%s2354_s1 + $0x3f8] sm:$0xff]  ;;  %v345_v4 = vld [vmem:[%s2354_s1 + $0x3e0] sm:$0xff]  ;;  %v347_v5 = vld [vmem:[%s2354_s1 + $0x3f0] sm:$0xff] }
  0x2a   : > { %413 = vmatprep.subr.mxu0 %v254_v44  ;;  %484 = vmatprep.subr.mxu1 %v256_v45  ;;  %v338_v6 = vld [vmem:[%s2354_s1 + $0x3a8] sm:$0xff]  ;;  %v340_v7 = vld [vmem:[%s2354_s1 + $0x3b8] sm:$0xff]  ;;  %v337_v8 = vld [vmem:[%s2354_s1 + $0x3a0] sm:$0xff] }
  0x2b   : > { %414 = vmatpush1.msra.mxu0 %v253_v46  ;;  %485 = vmatpush1.msra.mxu1 %v255_v47  ;;  %v339_v9 = vld [vmem:[%s2354_s1 + $0x3b0] sm:$0xff]  ;;  %v330_v10 = vld [vmem:[%s2354_s1 + $0x368] sm:$0xff]  ;;  %v332_v11 = vld [vmem:[%s2354_s1 + $0x378] sm:$0xff] }
  0x2c   : > { %415 = vmatprep.subr.mxu0 %v246_v48  ;;  %486 = vmatprep.subr.mxu1 %v248_v49  ;;  %v329_v12 = vld [vmem:[%s2354_s1 + $0x360] sm:$0xff]  ;;  %v331_v13 = vld [vmem:[%s2354_s1 + $0x370] sm:$0xff]  ;;  %v322_v14 = vld [vmem:[%s2354_s1 + $0x328] sm:$0xff] }
  0x2d   : > { %416 = vmatpush1.msra.mxu0 %v245_v50  ;;  %487 = vmatpush1.msra.mxu1 %v247_v51  ;;  %v324_v15 = vld [vmem:[%s2354_s1 + $0x338] sm:$0xff]  ;;  %v321_v16 = vld [vmem:[%s2354_s1 + $0x320] sm:$0xff]  ;;  %v323_v17 = vld [vmem:[%s2354_s1 + $0x330] sm:$0xff] }
  0x2e   : > { %417 = vmatprep.subr.mxu0 %v238_v52  ;;  %488 = vmatprep.subr.mxu1 %v240_v53  ;;  %v314_v18 = vld [vmem:[%s2354_s1 + $0x2e8] sm:$0xff]  ;;  %v316_v19 = vld [vmem:[%s2354_s1 + $0x2f8] sm:$0xff]  ;;  %v313_v20 = vld [vmem:[%s2354_s1 + $0x2e0] sm:$0xff] }
  0x2f   : > { %418 = vmatpush1.msra.mxu0 %v237_v54  ;;  %489 = vmatpush1.msra.mxu1 %v239_v55  ;;  %v315_v21 = vld [vmem:[%s2354_s1 + $0x2f0] sm:$0xff]  ;;  %v306_v22 = vld [vmem:[%s2354_s1 + $0x2a8] sm:$0xff]  ;;  %v308_v23 = vld [vmem:[%s2354_s1 + $0x2b8] sm:$0xff] }
  0x30   : > { %419 = vmatprep.subr.mxu0 %v230_v56  ;;  %490 = vmatprep.subr.mxu1 %v232_v57  ;;  %v305_v24 = vld [vmem:[%s2354_s1 + $0x2a0] sm:$0xff]  ;;  %v307_v25 = vld [vmem:[%s2354_s1 + $0x2b0] sm:$0xff]  ;;  %v298_v26 = vld [vmem:[%s2354_s1 + $0x268] sm:$0xff] }
  0x31   : > { %420 = vmatpush1.msra.mxu0 %v229_v58  ;;  %491 = vmatpush1.msra.mxu1 %v231_v59  ;;  %v300_v27 = vld [vmem:[%s2354_s1 + $0x278] sm:$0xff]  ;;  %v297_v28 = vld [vmem:[%s2354_s1 + $0x260] sm:$0xff]  ;;  %v299_v29 = vld [vmem:[%s2354_s1 + $0x270] sm:$0xff] }
  0x32   : > { %421 = vmatprep.subr.mxu0 %v222_v60  ;;  %492 = vmatprep.subr.mxu1 %v224_v61  ;;  %v290_v30 = vld [vmem:[%s2354_s1 + $0x228] sm:$0xff]  ;;  %v292_v31 = vld [vmem:[%s2354_s1 + $0x238] sm:$0xff]  ;;  %v289_v32 = vld [vmem:[%s2354_s1 + $0x220] sm:$0xff] }
  0x33   : > { %422 = vmatpush1.msra.mxu0 %v221_v62  ;;  %455 = vmatprep.mubr.f32.mxu0 %v1425_v1  ;;  %v291_v33 = vld [vmem:[%s2354_s1 + $0x230] sm:$0xff]  ;;  %v282_v34 = vld [vmem:[%s2354_s1 + $0x1e8] sm:$0xff]  ;;  %v284_v35 = vld [vmem:[%s2354_s1 + $0x1f8] sm:$0xff] }
  0x34   : > { %493 = vmatpush1.msra.mxu1 %v223_v63  ;;  %526 = vmatprep.mubr.f32.mxu1 %v1425_v1  ;;  %v281_v36 = vld [vmem:[%s2354_s1 + $0x1e0] sm:$0xff]  ;;  %v283_v37 = vld [vmem:[%s2354_s1 + $0x1f0] sm:$0xff]  ;;  %v274_v38 = vld [vmem:[%s2354_s1 + $0x1a8] sm:$0xff] }
  0x35   : > { %456 = vmatmul.mubr.f32.vlgmr.msra.gmra.mxu0 %v1707_v0  ;;  %527 = vmatmul.mubr.f32.vlgmr.msra.gmra.mxu1 %v1707_v0  ;;  %v276_v39 = vld [vmem:[%s2354_s1 + $0x1b8] sm:$0xff]  ;;  %v273_v40 = vld [vmem:[%s2354_s1 + $0x1a0] sm:$0xff]  ;;  %v275_v41 = vld [vmem:[%s2354_s1 + $0x1b0] sm:$0xff] }
  0x36   : > { %533 = vmatprep.subr.mxu0 %v346_v2  ;;  %604 = vmatprep.subr.mxu1 %v348_v3  ;;  %v266_v42 = vld [vmem:[%s2354_s1 + $0x168] sm:$0xff]  ;;  %v268_v43 = vld [vmem:[%s2354_s1 + $0x178] sm:$0xff]  ;;  %v265_v44 = vld [vmem:[%s2354_s1 + $0x160] sm:$0xff] }
  0x37   : > { %534 = vmatpush1.msra.mxu0 %v345_v4  ;;  %605 = vmatpush1.msra.mxu1 %v347_v5  ;;  %v267_v45 = vld [vmem:[%s2354_s1 + $0x170] sm:$0xff]  ;;  %v258_v46 = vld [vmem:[%s2354_s1 + $0x128] sm:$0xff]  ;;  %v260_v47 = vld [vmem:[%s2354_s1 + $0x138] sm:$0xff] }
  0x38   : > { %535 = vmatprep.subr.mxu0 %v338_v6  ;;  %606 = vmatprep.subr.mxu1 %v340_v7  ;;  %v257_v48 = vld [vmem:[%s2354_s1 + $0x120] sm:$0xff]  ;;  %v259_v49 = vld [vmem:[%s2354_s1 + $0x130] sm:$0xff]  ;;  %v250_v50 = vld [vmem:[%s2354_s1 + $0xe8] sm:$0xff] }
  0x39   : > { %536 = vmatpush1.msra.mxu0 %v337_v8  ;;  %607 = vmatpush1.msra.mxu1 %v339_v9  ;;  %v252_v51 = vld [vmem:[%s2354_s1 + $0xf8] sm:$0xff]  ;;  %v249_v52 = vld [vmem:[%s2354_s1 + $0xe0] sm:$0xff]  ;;  %v251_v53 = vld [vmem:[%s2354_s1 + $0xf0] sm:$0xff] }
  0x3a   : > { %537 = vmatprep.subr.mxu0 %v330_v10  ;;  %608 = vmatprep.subr.mxu1 %v332_v11  ;;  %v242_v54 = vld [vmem:[%s2354_s1 + $0xa8] sm:$0xff]  ;;  %v244_v55 = vld [vmem:[%s2354_s1 + $0xb8] sm:$0xff]  ;;  %v241_v56 = vld [vmem:[%s2354_s1 + $0xa0] sm:$0xff] }
  0x3b   : > { %538 = vmatpush1.msra.mxu0 %v329_v12  ;;  %609 = vmatpush1.msra.mxu1 %v331_v13  ;;  %v243_v57 = vld [vmem:[%s2354_s1 + $0xb0] sm:$0xff]  ;;  %v234_v58 = vld [vmem:[%s2354_s1 + $0x68] sm:$0xff]  ;;  %v236_v59 = vld [vmem:[%s2354_s1 + $0x78] sm:$0xff] }
  0x3c   : > { %539 = vmatprep.subr.mxu0 %v322_v14  ;;  %610 = vmatprep.subr.mxu1 %v324_v15  ;;  %v233_v60 = vld [vmem:[%s2354_s1 + $0x60] sm:$0xff]  ;;  %v235_v61 = vld [vmem:[%s2354_s1 + $0x70] sm:$0xff]  ;;  %v226_v62 = vld [vmem:[%s2354_s1 + $0x28] sm:$0xff] }
  0x3d   : > { %540 = vmatpush1.msra.mxu0 %v321_v16  ;;  %611 = vmatpush1.msra.mxu1 %v323_v17  ;;  %v228_v63 = vld [vmem:[%s2354_s1 + $0x38] sm:$0xff]  ;;  %v225_v2 = vld [vmem:[%s2354_s1 + $0x20] sm:$0xff]  ;;  %v227_v3 = vld [vmem:[%s2354_s1 + $0x30] sm:$0xff] }
  0x3e   : > { %541 = vmatprep.subr.mxu0 %v314_v18  ;;  %612 = vmatprep.subr.mxu1 %v316_v19  ;;  %v714_v4 = vld [vmem:[%s2356_s3 + $0xf8] sm:$0xff]  ;;  %v713_v8 = vld [vmem:[%s2356_s3 + $0xf0] sm:$0xff]  ;;  %v744_v11 = vld [vmem:[%s2356_s3 + $0x1e8] sm:$0xff] }
  0x3f   : > { %542 = vmatpush1.msra.mxu0 %v313_v20  ;;  %613 = vmatpush1.msra.mxu1 %v315_v21  ;;  %v746_v5 = vld [vmem:[%s2356_s3 + $0x1f8] sm:$0xff]  ;;  %v697_v9 = vld [vmem:[%s2356_s3 + $0x70] sm:$0xff]  ;;  %v696_v12 = vld [vmem:[%s2356_s3 + $0x68] sm:$0xff] }
  0x40   : > { %543 = vmatprep.subr.mxu0 %v306_v22  ;;  %614 = vmatprep.subr.mxu1 %v308_v23  ;;  %v698_v6 = vld [vmem:[%s2356_s3 + $0x78] sm:$0xff]  ;;  %v729_v10 = vld [vmem:[%s2356_s3 + $0x170] sm:$0xff]  ;;  %v728_v13 = vld [vmem:[%s2356_s3 + $0x168] sm:$0xff] }
  0x41   : > { %544 = vmatpush1.msra.mxu0 %v305_v24  ;;  %615 = vmatpush1.msra.mxu1 %v307_v25  ;;  %v730_v7 = vld [vmem:[%s2356_s3 + $0x178] sm:$0xff]  ;;  %v711_v14 = vld [vmem:[%s2356_s3 + $0xe0] sm:$0xff]  ;;  %v709_v22 = vld [vmem:[%s2356_s3 + $0xd0] sm:$0xff] }
  0x42   : > { %545 = vmatprep.subr.mxu0 %v298_v26  ;;  %616 = vmatprep.subr.mxu1 %v300_v27  ;;  %v743_v15 = vld [vmem:[%s2356_s3 + $0x1e0] sm:$0xff]  ;;  %v710_v18 = vld [vmem:[%s2356_s3 + $0xd8] sm:$0xff]  ;;  %v741_v23 = vld [vmem:[%s2356_s3 + $0x1d0] sm:$0xff] }
  0x43   : > { %546 = vmatpush1.msra.mxu0 %v297_v28  ;;  %617 = vmatpush1.msra.mxu1 %v299_v29  ;;  %v695_v16 = vld [vmem:[%s2356_s3 + $0x60] sm:$0xff]  ;;  %v742_v19 = vld [vmem:[%s2356_s3 + $0x1d8] sm:$0xff]  ;;  %v693_v24 = vld [vmem:[%s2356_s3 + $0x50] sm:$0xff] }
  0x44   : > { %547 = vmatprep.subr.mxu0 %v290_v30  ;;  %618 = vmatprep.subr.mxu1 %v292_v31  ;;  %v727_v17 = vld [vmem:[%s2356_s3 + $0x160] sm:$0xff]  ;;  %v694_v20 = vld [vmem:[%s2356_s3 + $0x58] sm:$0xff]  ;;  %v725_v25 = vld [vmem:[%s2356_s3 + $0x150] sm:$0xff] }
  0x45   : > { %548 = vmatpush1.msra.mxu0 %v289_v32  ;;  %619 = vmatpush1.msra.mxu1 %v291_v33  ;;  %v726_v21 = vld [vmem:[%s2356_s3 + $0x158] sm:$0xff]  ;;  %v708_v26 = vld [vmem:[%s2356_s3 + $0xc8] sm:$0xff]  ;;  %v707_v30 = vld [vmem:[%s2356_s3 + $0xc0] sm:$0xff] }
  0x46   : > { %549 = vmatprep.subr.mxu0 %v282_v34  ;;  %620 = vmatprep.subr.mxu1 %v284_v35  ;;  %v740_v27 = vld [vmem:[%s2356_s3 + $0x1c8] sm:$0xff]  ;;  %v739_v31 = vld [vmem:[%s2356_s3 + $0x1c0] sm:$0xff]  ;;  %v706_v34 = vld [vmem:[%s2356_s3 + $0xb8] sm:$0xff] }
  0x47   : > { %550 = vmatpush1.msra.mxu0 %v281_v36  ;;  %621 = vmatpush1.msra.mxu1 %v283_v37  ;;  %v692_v28 = vld [vmem:[%s2356_s3 + $0x48] sm:$0xff]  ;;  %v691_v32 = vld [vmem:[%s2356_s3 + $0x40] sm:$0xff]  ;;  %v738_v35 = vld [vmem:[%s2356_s3 + $0x1b8] sm:$0xff] }
  0x48   : > { %551 = vmatprep.subr.mxu0 %v274_v38  ;;  %622 = vmatprep.subr.mxu1 %v276_v39  ;;  %v724_v29 = vld [vmem:[%s2356_s3 + $0x148] sm:$0xff]  ;;  %v723_v33 = vld [vmem:[%s2356_s3 + $0x140] sm:$0xff]  ;;  %v690_v36 = vld [vmem:[%s2356_s3 + $0x38] sm:$0xff] }
  0x49   : > { %552 = vmatpush1.msra.mxu0 %v273_v40  ;;  %623 = vmatpush1.msra.mxu1 %v275_v41  ;;  %v722_v37 = vld [vmem:[%s2356_s3 + $0x138] sm:$0xff]  ;;  %v705_v38 = vld [vmem:[%s2356_s3 + $0xb0] sm:$0xff] }
  0x4a   : > { %553 = vmatprep.subr.mxu0 %v266_v42  ;;  %624 = vmatprep.subr.mxu1 %v268_v43  ;;  %v737_v39 = vld [vmem:[%s2356_s3 + $0x1b0] sm:$0xff]  ;;  %v704_v42 = vld [vmem:[%s2356_s3 + $0xa8] sm:$0xff] }
  0x4b   : > { %554 = vmatpush1.msra.mxu0 %v265_v44  ;;  %625 = vmatpush1.msra.mxu1 %v267_v45  ;;  %v689_v40 = vld [vmem:[%s2356_s3 + $0x30] sm:$0xff]  ;;  %v736_v43 = vld [vmem:[%s2356_s3 + $0x1a8] sm:$0xff] }
  0x4c   : > { %555 = vmatprep.subr.mxu0 %v258_v46  ;;  %626 = vmatprep.subr.mxu1 %v260_v47  ;;  %v721_v41 = vld [vmem:[%s2356_s3 + $0x130] sm:$0xff]  ;;  %v688_v44 = vld [vmem:[%s2356_s3 + $0x28] sm:$0xff]  ;;  %v703_v46 = vld [vmem:[%s2356_s3 + $0xa0] sm:$0xff] }
  0x4d   : > { %556 = vmatpush1.msra.mxu0 %v257_v48  ;;  %627 = vmatpush1.msra.mxu1 %v259_v49  ;;  %v720_v45 = vld [vmem:[%s2356_s3 + $0x128] sm:$0xff]  ;;  %v735_v47 = vld [vmem:[%s2356_s3 + $0x1a0] sm:$0xff] }
  0x4e   : > { %557 = vmatprep.subr.mxu0 %v250_v50  ;;  %628 = vmatprep.subr.mxu1 %v252_v51  ;;  %v687_v48 = vld [vmem:[%s2356_s3 + $0x20] sm:$0xff]  ;;  %v702_v50 = vld [vmem:[%s2356_s3 + $0x98] sm:$0xff] }
  0x4f   : > { %558 = vmatpush1.msra.mxu0 %v249_v52  ;;  %629 = vmatpush1.msra.mxu1 %v251_v53  ;;  %v719_v49 = vld [vmem:[%s2356_s3 + $0x120] sm:$0xff]  ;;  %v734_v51 = vld [vmem:[%s2356_s3 + $0x198] sm:$0xff] }
  0x50   : > { %559 = vmatprep.subr.mxu0 %v242_v54  ;;  %630 = vmatprep.subr.mxu1 %v244_v55  ;;  %v686_v52 = vld [vmem:[%s2356_s3 + $0x18] sm:$0xff]  ;;  %v701_v54 = vld [vmem:[%s2356_s3 + $0x90] sm:$0xff] }
  0x51   : > { %560 = vmatpush1.msra.mxu0 %v241_v56  ;;  %631 = vmatpush1.msra.mxu1 %v243_v57  ;;  %v718_v53 = vld [vmem:[%s2356_s3 + $0x118] sm:$0xff]  ;;  %v733_v55 = vld [vmem:[%s2356_s3 + $0x190] sm:$0xff] }
  0x52   : > { %561 = vmatprep.subr.mxu0 %v234_v58  ;;  %632 = vmatprep.subr.mxu1 %v236_v59  ;;  %v685_v56 = vld [vmem:[%s2356_s3 + $0x10] sm:$0xff]  ;;  %v700_v58 = vld [vmem:[%s2356_s3 + $0x88] sm:$0xff] }
  0x53   : > { %562 = vmatpush1.msra.mxu0 %v233_v60  ;;  %633 = vmatpush1.msra.mxu1 %v235_v61  ;;  %v717_v57 = vld [vmem:[%s2356_s3 + $0x110] sm:$0xff]  ;;  %v732_v59 = vld [vmem:[%s2356_s3 + $0x188] sm:$0xff] }
  0x54   : > { %563 = vmatprep.subr.mxu0 %v226_v62  ;;  %634 = vmatprep.subr.mxu1 %v228_v63  ;;  %v684_v60 = vld [vmem:[%s2356_s3 + $0x8] sm:$0xff]  ;;  %v699_v62 = vld [vmem:[%s2356_s3 + $0x80] sm:$0xff] }
  0x55   : > { %564 = vmatpush1.msra.mxu0 %v225_v2  ;;  %597 = vmatprep.mubr.f32.mxu0 %v1425_v1  ;;  %v716_v61 = vld [vmem:[%s2356_s3 + $0x108] sm:$0xff]  ;;  %v731_v63 = vld [vmem:[%s2356_s3 + $0x180] sm:$0xff] }
  0x56   : > { %635 = vmatpush1.msra.mxu1 %v227_v3  ;;  %668 = vmatprep.mubr.f32.mxu1 %v1425_v1  ;;  %v745_v1 = vld [vmem:[%s2356_s3 + $0x1f0] sm:$0xff]  ;;  %v683_v2 = vld [vmem:[%s2356_s3] sm:$0xff] }
  0x57   : > { %598 = vmatmul.mubr.f32.vlgmr.msra.gmra.mxu0 %v1707_v0  ;;  %669 = vmatmul.mubr.f32.vlgmr.msra.gmra.mxu1 %v1707_v0  ;;  %v712_v0 = vld [vmem:[%s2356_s3 + $0xe8] sm:$0xff]  ;;  %v715_v3 = vld [vmem:[%s2356_s3 + $0x100] sm:$0xff] }
  0x58   : > { %1183 = vmatprep.subr.mxu0 %v714_v4  ;;  %1218 = vmatprep.subr.mxu1 %v746_v5  ;;  %v778_v4 = vld [vmem:[%s2356_s3 + $0x2f8] sm:$0xff] }
  0x59   : > { %1184 = vmatpush3.msra.mxu0 %v698_v6  ;;  %1219 = vmatpush3.msra.mxu1 %v730_v7  ;;  %v810_v5 = vld [vmem:[%s2356_s3 + $0x3f8] sm:$0xff]  ;;  %v351_v6 = vlaneseq }
  0x5a   : > { %1185 = vmatprep.subr.mxu0 %v713_v8  ;;  %1220 = vmatprep.subr.mxu1 %v745_v1 }
  0x5b   : > { %1186 = vmatpush3.msra.mxu0 %v697_v9  ;;  %1221 = vmatpush3.msra.mxu1 %v729_v10  ;;  %v2107_v7 = vshrl.u32 %v351_v6, 7  ;;  %v2114_v9 = vld [vmem:[%s2355_s2] sm:$0xff]  ;;  %v784_v6 = vld [vmem:[%s2356_s3 + $0x328] sm:$0xff] }
  0x5c   : > { %1187 = vmatprep.subr.mxu0 %v712_v0  ;;  %1222 = vmatprep.subr.mxu1 %v744_v11 }
  0x5d   : > { %1188 = vmatpush3.msra.mxu0 %v696_v12  ;;  %1223 = vmatpush3.msra.mxu1 %v728_v13  ;;  %v361_v8 = vsub.s32 2, %v2107_v7  ;;  %v353_v1 = vsub.s32 0, %v2107_v7  ;;  %v357_v10 = vsub.s32 1, %v2107_v7  ;;  %v365_v0 = vsub.s32 3, %v2107_v7 }
  0x5e   : > { %1189 = vmatprep.subr.mxu0 %v711_v14  ;;  %1224 = vmatprep.subr.mxu1 %v743_v15 }
  0x5f   : > { %1190 = vmatpush3.msra.mxu0 %v695_v16  ;;  %1225 = vmatpush3.msra.mxu1 %v727_v17  ;;  %v362_v11 = vrot.slane %v2114_v9, %v361_v8  ;;  %v354_v12 = vrot.slane %v2114_v9, %v353_v1  ;;  %v358_v13 = vrot.slane %v2114_v9, %v357_v10  ;;  %v767_v8 = vld [vmem:[%s2356_s3 + $0x2a0] sm:$0xff]  ;;  %v377_v10 = vsub.s32 6, %v2107_v7 }
  0x60   : > { %1191 = vmatprep.subr.mxu0 %v710_v18  ;;  %1226 = vmatprep.subr.mxu1 %v742_v19  ;;  %v366_v14 = vrot.slane %v2114_v9, %v365_v0  ;;  %v799_v1 = vld [vmem:[%s2356_s3 + $0x3a0] sm:$0xff] }
  0x61   : > { %1192 = vmatpush3.msra.mxu0 %v694_v20  ;;  %1227 = vmatpush3.msra.mxu1 %v726_v21  ;;  %v751_v0 = vld [vmem:[%s2356_s3 + $0x220] sm:$0xff] }
  0x62   : > { %1193 = vmatprep.subr.mxu0 %v709_v22  ;;  %1228 = vmatprep.subr.mxu1 %v741_v23 }
  0x63   : > { %1194 = vmatpush3.msra.mxu0 %v693_v24  ;;  %1229 = vmatpush3.msra.mxu1 %v725_v25 }
  0x64   : > { %1195 = vmatprep.subr.mxu0 %v708_v26  ;;  %1230 = vmatprep.subr.mxu1 %v740_v27  ;;  %v762_v27 = vld [vmem:[%s2356_s3 + $0x278] sm:$0xff] }
  0x65   : > { %1196 = vmatpush3.msra.mxu0 %v692_v28  ;;  %1231 = vmatpush3.msra.mxu1 %v724_v29  ;;  %v794_v28 = vld [vmem:[%s2356_s3 + $0x378] sm:$0xff]  ;;  %v777_v29 = vld [vmem:[%s2356_s3 + $0x2f0] sm:$0xff] }
  0x66   : > { %1197 = vmatprep.subr.mxu0 %v707_v30  ;;  %1232 = vmatprep.subr.mxu1 %v739_v31  ;;  %v809_v30 = vld [vmem:[%s2356_s3 + $0x3f0] sm:$0xff] }
  0x67   : > { %1198 = vmatpush3.msra.mxu0 %v691_v32  ;;  %1233 = vmatpush3.msra.mxu1 %v723_v33  ;;  %v761_v31 = vld [vmem:[%s2356_s3 + $0x270] sm:$0xff]  ;;  %v776_v33 = vld [vmem:[%s2356_s3 + $0x2e8] sm:$0xff] }
  0x68   : > { %1199 = vmatprep.subr.mxu0 %v706_v34  ;;  %1234 = vmatprep.subr.mxu1 %v738_v35  ;;  %v793_v32 = vld [vmem:[%s2356_s3 + $0x370] sm:$0xff]  ;;  %v808_v34 = vld [vmem:[%s2356_s3 + $0x3e8] sm:$0xff] }
  0x69   : > { %1200 = vmatpush3.msra.mxu0 %v690_v36  ;;  %1235 = vmatpush3.msra.mxu1 %v722_v37  ;;  %v760_v35 = vld [vmem:[%s2356_s3 + $0x268] sm:$0xff]  ;;  %v775_v37 = vld [vmem:[%s2356_s3 + $0x2e0] sm:$0xff] }
  0x6a   : > { %1201 = vmatprep.subr.mxu0 %v705_v38  ;;  %1236 = vmatprep.subr.mxu1 %v737_v39  ;;  %v792_v36 = vld [vmem:[%s2356_s3 + $0x368] sm:$0xff]  ;;  %v807_v38 = vld [vmem:[%s2356_s3 + $0x3e0] sm:$0xff] }
  0x6b   : > { %1202 = vmatpush3.msra.mxu0 %v689_v40  ;;  %1237 = vmatpush3.msra.mxu1 %v721_v41  ;;  %v759_v39 = vld [vmem:[%s2356_s3 + $0x260] sm:$0xff]  ;;  %v774_v41 = vld [vmem:[%s2356_s3 + $0x2d8] sm:$0xff] }
  0x6c   : > { %1203 = vmatprep.subr.mxu0 %v704_v42  ;;  %1238 = vmatprep.subr.mxu1 %v736_v43  ;;  %v791_v40 = vld [vmem:[%s2356_s3 + $0x360] sm:$0xff]  ;;  %v806_v42 = vld [vmem:[%s2356_s3 + $0x3d8] sm:$0xff] }
  0x6d   : > { %1204 = vmatpush3.msra.mxu0 %v688_v44  ;;  %1239 = vmatpush3.msra.mxu1 %v720_v45  ;;  %v758_v43 = vld [vmem:[%s2356_s3 + $0x258] sm:$0xff]  ;;  %v773_v45 = vld [vmem:[%s2356_s3 + $0x2d0] sm:$0xff] }
  0x6e   : > { %1205 = vmatprep.subr.mxu0 %v703_v46  ;;  %1240 = vmatprep.subr.mxu1 %v735_v47  ;;  %v790_v44 = vld [vmem:[%s2356_s3 + $0x358] sm:$0xff]  ;;  %v805_v46 = vld [vmem:[%s2356_s3 + $0x3d0] sm:$0xff] }
  0x6f   : > { %1206 = vmatpush3.msra.mxu0 %v687_v48  ;;  %1241 = vmatpush3.msra.mxu1 %v719_v49  ;;  %v757_v47 = vld [vmem:[%s2356_s3 + $0x250] sm:$0xff]  ;;  %v772_v49 = vld [vmem:[%s2356_s3 + $0x2c8] sm:$0xff] }
  0x70   : > { %1207 = vmatprep.subr.mxu0 %v702_v50  ;;  %1242 = vmatprep.subr.mxu1 %v734_v51  ;;  %v789_v48 = vld [vmem:[%s2356_s3 + $0x350] sm:$0xff]  ;;  %v804_v50 = vld [vmem:[%s2356_s3 + $0x3c8] sm:$0xff] }
  0x71   : > { %1208 = vmatpush3.msra.mxu0 %v686_v52  ;;  %1243 = vmatpush3.msra.mxu1 %v718_v53  ;;  %v756_v51 = vld [vmem:[%s2356_s3 + $0x248] sm:$0xff]  ;;  %v771_v53 = vld [vmem:[%s2356_s3 + $0x2c0] sm:$0xff] }
  0x72   : > { %1209 = vmatprep.subr.mxu0 %v701_v54  ;;  %1244 = vmatprep.subr.mxu1 %v733_v55  ;;  %v788_v52 = vld [vmem:[%s2356_s3 + $0x348] sm:$0xff]  ;;  %v803_v54 = vld [vmem:[%s2356_s3 + $0x3c0] sm:$0xff] }
  0x73   : > { %1210 = vmatpush3.msra.mxu0 %v685_v56  ;;  %1245 = vmatpush3.msra.mxu1 %v717_v57  ;;  %v755_v55 = vld [vmem:[%s2356_s3 + $0x240] sm:$0xff]  ;;  %v770_v57 = vld [vmem:[%s2356_s3 + $0x2b8] sm:$0xff] }
  0x74   : > { %1211 = vmatprep.subr.mxu0 %v700_v58  ;;  %1246 = vmatprep.subr.mxu1 %v732_v59  ;;  %v787_v56 = vld [vmem:[%s2356_s3 + $0x340] sm:$0xff]  ;;  %v802_v58 = vld [vmem:[%s2356_s3 + $0x3b8] sm:$0xff] }
  0x75   : > { %1212 = vmatpush3.msra.mxu0 %v684_v60  ;;  %1247 = vmatpush3.msra.mxu1 %v716_v61  ;;  %v754_v59 = vld [vmem:[%s2356_s3 + $0x238] sm:$0xff]  ;;  %v769_v61 = vld [vmem:[%s2356_s3 + $0x2b0] sm:$0xff] }
  0x76   : > { %1213 = vmatprep.subr.mxu0 %v699_v62  ;;  %1248 = vmatprep.subr.mxu1 %v731_v63  ;;  %v786_v60 = vld [vmem:[%s2356_s3 + $0x338] sm:$0xff]  ;;  %v801_v62 = vld [vmem:[%s2356_s3 + $0x3b0] sm:$0xff] }
  0x77   : > { %1214 = vmatpush3.msra.mxu0 %v683_v2  ;;  %1249 = vmatpush3.msra.mxu1 %v715_v3  ;;  %v753_v63 = vld [vmem:[%s2356_s3 + $0x230] sm:$0xff]  ;;  %v768_v3 = vld [vmem:[%s2356_s3 + $0x2a8] sm:$0xff] }
  0x78   : > { %1253 = vmatprep.subr.mxu0 %v778_v4  ;;  %1288 = vmatprep.subr.mxu1 %v810_v5  ;;  %v785_v2 = vld [vmem:[%s2356_s3 + $0x330] sm:$0xff]  ;;  %v800_v4 = vld [vmem:[%s2356_s3 + $0x3a8] sm:$0xff] }
  0x79   : > { %v752_v5 = vld [vmem:[%s2356_s3 + $0x228] sm:$0xff] }
  0xf5   : > { %v457_v15 = vpop.f32.mrf.mxu0  ;;  %v528_v16 = vpop.f32.mrf.mxu1 }
  0xf6   : > { %v529_v17 = vadd.f32 %v528_v16, %v362_v11  ;;  %v458_v18 = vadd.f32 %v457_v15, %v354_v12  ;;  %v783_v11 = vld [vmem:[%s2356_s3 + $0x320] sm:$0xff]  ;;  %v369_v12 = vsub.s32 4, %v2107_v7  ;;  %v373_v15 = vsub.s32 5, %v2107_v7 }
  0xf7   : > { %v459_v19 = vpop.f32.mrf.mxu0  ;;  %v530_v20 = vpop.f32.mrf.mxu1  ;;  %v381_v16 = vsub.s32 7, %v2107_v7  ;;  %v797_v7 = vld [vmem:[%s2356_s3 + $0x390] sm:$0xff] }
  0xf8   : > { %v460_v21 = vadd.f32 %v459_v19, %v358_v13  ;;  %v531_v22 = vadd.f32 %v530_v20, %v366_v14  ;;  %v677_v23 = vmax.f32 %v529_v17, 0.0  ;;  %v675_v26 = vmax.f32 %v458_v18, 0.0  ;;  %v766_v13 = vld [vmem:[%s2356_s3 + $0x298] sm:$0xff]  ;;  %v765_v20 = vld [vmem:[%s2356_s3 + $0x290] sm:$0xff] }
  0xf9   : > { %v798_v14 = vld [vmem:[%s2356_s3 + $0x398] sm:$0xff]  ;;  %v378_v19 = vrot.slane %v2114_v9, %v377_v10 }
  0xfa   : > { %v676_v24 = vmax.f32 %v460_v21, 0.0  ;;  %v678_v25 = vmax.f32 %v531_v22, 0.0  ;;  %v750_v17 = vld [vmem:[%s2356_s3 + $0x218] sm:$0xff]  ;;  %v370_v21 = vrot.slane %v2114_v9, %v369_v12  ;;  %v749_v22 = vld [vmem:[%s2356_s3 + $0x210] sm:$0xff] }
  0xfb   : > { %v782_v18 = vld [vmem:[%s2356_s3 + $0x318] sm:$0xff] }
  0xfc   : > { %882 = vmatprep.mubr.f32.mxu0 %v676_v24  ;;  %952 = vmatprep.mubr.f32.mxu1 %v678_v25  ;;  %v374_v24 = vrot.slane %v2114_v9, %v373_v15  ;;  %v382_v25 = vrot.slane %v2114_v9, %v381_v16  ;;  %v780_v9 = vld [vmem:[%s2356_s3 + $0x308] sm:$0xff] }
  0xfd   : > { %883 = vmatmul.mubr.f32.vlgmr.msra.gmra.mxu0 %v675_v26  ;;  %953 = vmatmul.mubr.f32.vlgmr.msra.gmra.mxu1 %v677_v23  ;;  %v781_v23 = vld [vmem:[%s2356_s3 + $0x310] sm:$0xff]  ;;  %v764_v26 = vld [vmem:[%s2356_s3 + $0x288] sm:$0xff] }
  0xfe   : > { %1254 = vmatpush3.msra.mxu0 %v762_v27  ;;  %1289 = vmatpush3.msra.mxu1 %v794_v28  ;;  %v796_v27 = vld [vmem:[%s2356_s3 + $0x388] sm:$0xff] }
  0xff   : > { %1255 = vmatprep.subr.mxu0 %v777_v29  ;;  %1290 = vmatprep.subr.mxu1 %v809_v30  ;;  %v748_v30 = vld [vmem:[%s2356_s3 + $0x208] sm:$0xff] }
 0x100   : > { %1256 = vmatpush3.msra.mxu0 %v761_v31  ;;  %1291 = vmatpush3.msra.mxu1 %v793_v32  ;;  %v763_v32 = vld [vmem:[%s2356_s3 + $0x280] sm:$0xff] }
 0x101   : > { %1257 = vmatprep.subr.mxu0 %v776_v33  ;;  %1292 = vmatprep.subr.mxu1 %v808_v34  ;;  %v795_v33 = vld [vmem:[%s2356_s3 + $0x380] sm:$0xff] }
 0x102   : > { %1258 = vmatpush3.msra.mxu0 %v760_v35  ;;  %1293 = vmatpush3.msra.mxu1 %v792_v36 }
 0x103   : > { %1259 = vmatprep.subr.mxu0 %v775_v37  ;;  %1294 = vmatprep.subr.mxu1 %v807_v38  ;;  %v747_v37 = vld [vmem:[%s2356_s3 + $0x200] sm:$0xff] }
 0x104   : > { %1260 = vmatpush3.msra.mxu0 %v759_v39  ;;  %1295 = vmatpush3.msra.mxu1 %v791_v40  ;;  %v779_v38 = vld [vmem:[%s2356_s3 + $0x300] sm:$0xff] }
 0x105   : > { %1261 = vmatprep.subr.mxu0 %v774_v41  ;;  %1296 = vmatprep.subr.mxu1 %v806_v42 }
 0x106   : > { %1262 = vmatpush3.msra.mxu0 %v758_v43  ;;  %1297 = vmatpush3.msra.mxu1 %v790_v44 }
 0x107   : > { %1263 = vmatprep.subr.mxu0 %v773_v45  ;;  %1298 = vmatprep.subr.mxu1 %v805_v46 }
 0x108   : > { %1264 = vmatpush3.msra.mxu0 %v757_v47  ;;  %1299 = vmatpush3.msra.mxu1 %v789_v48 }
 0x109   : > { %1265 = vmatprep.subr.mxu0 %v772_v49  ;;  %1300 = vmatprep.subr.mxu1 %v804_v50  ;;  %v1178_v49 = vld [vmem:[%s2357_s4] ss:$0 sm:$0xff] }
 0x10a   : > { %1266 = vmatpush3.msra.mxu0 %v756_v51  ;;  %1301 = vmatpush3.msra.mxu1 %v788_v52 }
 0x10b   : > { %1267 = vmatprep.subr.mxu0 %v771_v53  ;;  %1302 = vmatprep.subr.mxu1 %v803_v54 }
 0x10c   : > { %1268 = vmatpush3.msra.mxu0 %v755_v55  ;;  %1303 = vmatpush3.msra.mxu1 %v787_v56 }
 0x10d   : > { %1269 = vmatprep.subr.mxu0 %v770_v57  ;;  %1304 = vmatprep.subr.mxu1 %v802_v58 }
 0x10e   : > { %1270 = vmatpush3.msra.mxu0 %v754_v59  ;;  %1305 = vmatpush3.msra.mxu1 %v786_v60 }
 0x10f   : > { %1271 = vmatprep.subr.mxu0 %v769_v61  ;;  %1306 = vmatprep.subr.mxu1 %v801_v62 }
 0x110   : > { %1272 = vmatpush3.msra.mxu0 %v753_v63  ;;  %1307 = vmatpush3.msra.mxu1 %v785_v2 }
 0x111   : > { %1273 = vmatprep.subr.mxu0 %v768_v3  ;;  %1308 = vmatprep.subr.mxu1 %v800_v4 }
 0x112   : > { %1274 = vmatpush3.msra.mxu0 %v752_v5  ;;  %1309 = vmatpush3.msra.mxu1 %v784_v6 }
 0x113   : > { %1275 = vmatprep.subr.mxu0 %v767_v8  ;;  %1310 = vmatprep.subr.mxu1 %v799_v1 }
 0x114   : > { %1276 = vmatpush3.msra.mxu0 %v751_v0  ;;  %1311 = vmatpush3.msra.mxu1 %v783_v11 }
 0x115   : > { %1277 = vmatprep.subr.mxu0 %v766_v13  ;;  %1312 = vmatprep.subr.mxu1 %v798_v14 }
 0x116   : > { %1278 = vmatpush3.msra.mxu0 %v750_v17  ;;  %1313 = vmatpush3.msra.mxu1 %v782_v18 }
 0x117   : > { %v599_v28 = vpop.f32.mrf.mxu0  ;;  %v670_v29 = vpop.f32.mrf.mxu1  ;;  %1279 = vmatprep.subr.mxu0 %v765_v20  ;;  %1314 = vmatprep.subr.mxu1 %v797_v7 }
 0x118   : > { %v671_v31 = vadd.f32 %v670_v29, %v378_v19  ;;  %1280 = vmatpush3.msra.mxu0 %v749_v22  ;;  %1315 = vmatpush3.msra.mxu1 %v781_v23  ;;  %v600_v34 = vadd.f32 %v599_v28, %v370_v21 }
 0x119   : > { %v601_v35 = vpop.f32.mrf.mxu0  ;;  %v672_v36 = vpop.f32.mrf.mxu1  ;;  %1281 = vmatprep.subr.mxu0 %v764_v26  ;;  %1316 = vmatprep.subr.mxu1 %v796_v27 }
 0x11a   : > { %v602_v39 = vadd.f32 %v601_v35, %v374_v24  ;;  %v673_v40 = vadd.f32 %v672_v36, %v382_v25  ;;  %1282 = vmatpush3.msra.mxu0 %v748_v30  ;;  %1317 = vmatpush3.msra.mxu1 %v780_v9  ;;  %v681_v41 = vmax.f32 %v671_v31, 0.0  ;;  %v679_v44 = vmax.f32 %v600_v34, 0.0 }
 0x11b   : > { %1283 = vmatprep.subr.mxu0 %v763_v32  ;;  %1318 = vmatprep.subr.mxu1 %v795_v33 }
 0x11c   : > { %v680_v42 = vmax.f32 %v602_v39, 0.0  ;;  %v682_v43 = vmax.f32 %v673_v40, 0.0  ;;  %1284 = vmatpush3.msra.mxu0 %v747_v37  ;;  %1319 = vmatpush3.msra.mxu1 %v779_v38 }
 0x11e   : > { %1022 = vmatprep.mubr.f32.mxu0 %v680_v42  ;;  %1092 = vmatprep.mubr.f32.mxu1 %v682_v43 }
 0x11f   : > { %1023 = vmatmul.mubr.f32.vlgmr.msra.gmra.mxu0 %v679_v44  ;;  %1093 = vmatmul.mubr.f32.vlgmr.msra.gmra.mxu1 %v681_v41 }
 0x1bd   : > { %v1215_v45 = vpop.f32.mrf.mxu0  ;;  %v1250_v47 = vpop.f32.mrf.mxu1 }
 0x1bf   : > { %v1216_v46 = vpop.f32.mrf.mxu0  ;;  %v1251_v50 = vpop.f32.mrf.mxu1 }
 0x1c0   : > { %v1217_v48 = vadd.f32 %v1216_v46, %v1215_v45  ;;  %v1252_v54 = vadd.f32 %v1251_v50, %v1250_v47 }
 0x1c2   : > { %v885_v51 = vadd.f32 %v1217_v48, %v1178_v49 }
 0x1c4   : > { %v955_v57 = vadd.f32 %v1252_v54, %v885_v51 }
 0x1df   : > { %v1285_v52 = vpop.f32.mrf.mxu0  ;;  %v1320_v53 = vpop.f32.mrf.mxu1 }
 0x1e1   : > { %v1286_v55 = vpop.f32.mrf.mxu0  ;;  %v1321_v56 = vpop.f32.mrf.mxu1 }
 0x1e2   : > { %v1287_v58 = vadd.f32 %v1286_v55, %v1285_v52  ;;  %v1322_v60 = vadd.f32 %v1321_v56, %v1320_v53 }
 0x1e4   : > { %v1025_v59 = vadd.f32 %v1287_v58, %v955_v57 }
 0x1e6   : > { %v1095_v61 = vadd.f32 %v1322_v60, %v1025_v59 }
 0x1e8   : > { %1098 = vst [vmem:[%s215_s17] sm:$0xff] %v1095_v61 }
 0x1e9   : > { %1376 = shalt.err (!%p1373_p3)
}
 0x1ea   : > { %s1377_s7 = scalar_lea.hbm %s1111_s6, 128  ;;  %s1381_s14 = scalar_lea.hbm %s2358_s5, 256 }
 0x1eb   : > { %p1378_p4 = scmp.ne.s32.totalorder %s1111_s6, %s1377_s7  ;;  %p1382_p9 = scmp.lt.s32.totalorder %s1111_s6, %s2358_s5 }
 0x1ec   : > { %p1383_p10 = scmp.lt.s32.totalorder %s1381_s14, %s1377_s7 }
 0x1ed   : > { %p1379_p7 = pnand %p1378_p4, %p1495_p5 }
 0x1ee   : > { %p1384_p11 = por %p1383_p10, %p1382_p9 }
 0x1ef   : > { %p1380_p8 = pneg %p1379_p7 }
 0x1f1   : > { %p1385_p12 = pnand %p1384_p11, %p1380_p8 }
 0x1f3   : > { %1388 = shalt.err (!%p1385_p12)
}
 0x1f4   : > { %1323 = dma.vmem_to_hbm [thread:$0]  (%p1495_p5), %s1114_s23, 128, %s1111_s6, %s1100_s8  }
 0x1f5 PF: > { %p1329_p13 = scmp.ge.s32.totalorder %s1423_s21, 2  ;;  %s1125_s16 = sand.u32 1, %s1411_s18  }
 0x1f6   : > { %s1126_s17 = scalar_lea.sflag [#allocation3], %s1125_s16 }
 0x1f7   : > { %p1326_p0 = pnand %p1329_p13, %p1499_p6 }
 0x1f9   : > { %p1327_p1 = pneg %p1326_p0 }
 0x1fb   : > { %1406 = dma.done.wait (%p1327_p1), %s1126_s17, 128  }
 0x1fc   : > { %1408 = vsyncadd (%p1327_p1), %s1126_s17, 4294967168  ;;  %p15_p2 = scmp.ge.s32.totalorder %s1482_s24, 4   ;;  %s2361_s18 = smov %s1415_s19 }
 0x1fd   : > { %s2362_s19 = smov %s1419_s20  ;;  %s2363_s20 = smov %s1493_s27 }
 0x1fe   : > { %s2364_s21 = smov %s1482_s24  ;;  %17 = sbr.rel (!%p15_p2) target bundleno = 3 (0x3), region = 75 }
 0x203   :  { %1131 = vsyncpa [#allocation3], 1 }
 0x204   :  { %1133 = vsyncpa [#allocation3 + $0x1], 1 }

</bundles_post_ra>
